<compile_context>
chip_gen: v5e
topology: v5e:2x2
jax: 0.10.0
libtpu: 0.0.40
codegen_flags: <defaults>
</compile_context>

<pallas_src>
import math

import jax
import jax.numpy as jnp
from jax.experimental import pallas as pl
from jax.experimental.pallas import tpu as pltpu

M2PI = 2.0 * math.pi


def _round_up(x, m):
    return (x + m - 1) // m * m


def _nw_kernel(q_ref, qsq_ref, ksq_ref, kt_ref, v_ref, o_ref,
               num_acc, den_acc):
    # q_ref   : (tm, D)  f32  queries * (2 / kernel_len^2)   (matmul LHS)
    # qsq_ref : (tm, 1)  f32  |q|^2 / kernel_len^2
    # ksq_ref : (1, tn)  f32  |k|^2 / kernel_len^2  (padded cols = 1e8 sentinel)
    # kt_ref  : (D, tn)  f32  keys^T (lane-dense, MXU-native RHS)
    # v_ref   : (tn, P)       value tile (unpadded P)
    # o_ref   : (tm, P)       output tile
    # num_acc : (tm, P)  f32 scratch, den_acc : (tm, 1) f32 scratch
    n_idx = pl.program_id(1)

    @pl.when(n_idx == 0)
    def _():
        num_acc[...] = jnp.zeros_like(num_acc)
        den_acc[...] = jnp.zeros_like(den_acc)

    # 2 * (q . k) / kernel_len^2 straight off the MXU (factors folded in LHS).
    qk2 = jax.lax.dot_general(
        q_ref[...], kt_ref[...], (((1,), (0,)), ((), ())),
        preferred_element_type=jnp.float32)                      # (tm, tn)

    d2 = (qsq_ref[...] - qk2) + ksq_ref[...]                     # (tm, tn)
    cdist = jnp.sqrt(jnp.maximum(d2, 0.0))

    # Sparse (compact-support) kernel, clipped at zero.  Padded key columns
    # carry the 1e8 |k|^2 sentinel -> cdist >> 1 -> ker < 0 -> clipped here.
    theta = cdist * M2PI
    ker = (2.0 + jnp.cos(theta)) * (1.0 - cdist) * (1.0 / 3.0) \
        + jnp.sin(theta) * (1.0 / M2PI)
    ker = jnp.where(ker > 0.0, ker, 0.0)

    # Nadaraya-Watson accumulation:  num += K @ V ; den += rowsum(K).
    num_acc[...] += jnp.dot(ker.astype(v_ref.dtype), v_ref[...],
                            preferred_element_type=jnp.float32)
    den_acc[...] += jnp.sum(ker, axis=-1, keepdims=True)

    @pl.when(n_idx == pl.num_programs(1) - 1)
    def _():
        # Matches the torch module: epsilon added AFTER the division.
        o_ref[...] = (num_acc[...] / den_acc[...] + 1e-6).astype(o_ref.dtype)


def nw_sparse_kernel_regression(queries, keys, values, kernel_len, *,
                                tm=None, tn=None):
    """Pallas implementation of NWSparseKernelRegression.forward."""
    M, D = queries.shape
    N, P = values.shape
    assert keys.shape == (N, D)

    out_dtype = jnp.promote_types(jnp.promote_types(queries.dtype, keys.dtype),
                                  values.dtype)

    # ---- tile sizes -------------------------------------------------------
    # tm: guarantee >= 2 M tiles when M permits (megacore on the "parallel"
    # axis), capped at 256 rows.
    if tm is None:
        tm = min(256, _round_up(pl.cdiv(M, 2), 8))
    else:
        tm = max(8, _round_up(tm, 8))
    # tn: ~2048-class key tiles, multiple of 128, chosen to minimize padding.
    if tn is None:
        n_tiles = pl.cdiv(N, 2048)
        tn = _round_up(pl.cdiv(N, n_tiles), 128)
    else:
        tn = max(128, _round_up(tn, 128))

    Mp = _round_up(M, tm)
    Np = _round_up(N, tn)

    # ---- one-time wrapper precompute (hoisted out of the N loop) ----------
    kl = jnp.asarray(kernel_len, jnp.float32).reshape(())
    inv2 = 1.0 / (kl * kl)

    qf = queries.astype(jnp.float32)
    kf = keys.astype(jnp.float32)

    q_lhs = qf * (2.0 * inv2)                                    # (M, D)
    qsq = jnp.sum(qf * qf, axis=1, keepdims=True) * inv2          # (M, 1)
    ksq = (jnp.sum(kf * kf, axis=1) * inv2)[None, :]              # (1, N)
    k_t = kf.T                                                    # (D, N)
    v = values                                                    # (N, P) unpadded P

    if Mp != M:
        q_lhs = jnp.pad(q_lhs, ((0, Mp - M), (0, 0)))
        qsq = jnp.pad(qsq, ((0, Mp - M), (0, 0)))
    if Np != N:
        # Large FINITE sentinel (not inf): makes padded columns clip to 0 in
        # the kernel's `ker > 0` select without any per-step masking.
        ksq = jnp.pad(ksq, ((0, 0), (0, Np - N)), constant_values=1e8)
        k_t = jnp.pad(k_t, ((0, 0), (0, Np - N)))
        v = jnp.pad(v, ((0, Np - N), (0, 0)))

    out = pl.pallas_call(
        _nw_kernel,
        out_shape=jax.ShapeDtypeStruct((Mp, P), out_dtype),
        grid=(Mp // tm, Np // tn),
        in_specs=[
            pl.BlockSpec((tm, D), lambda i, n: (i, 0)),   # 2*q/kl^2
            pl.BlockSpec((tm, 1), lambda i, n: (i, 0)),   # |q|^2/kl^2
            pl.BlockSpec((1, tn), lambda i, n: (0, n)),   # |k|^2/kl^2 (+sentinel)
            pl.BlockSpec((D, tn), lambda i, n: (0, n)),   # keys^T (lane-dense)
            pl.BlockSpec((tn, P), lambda i, n: (n, 0)),   # values (unpadded P)
        ],
        out_specs=pl.BlockSpec((tm, P), lambda i, n: (i, 0)),
        scratch_shapes=[
            pltpu.VMEM((tm, P), jnp.float32),             # num accumulator
            pltpu.VMEM((tm, 1), jnp.float32),             # den accumulator
        ],
        compiler_params=pltpu.CompilerParams(
            dimension_semantics=("parallel", "arbitrary"),
            # Above v5e/v6e scoped defaults (16/32 MiB), below v7x physical.
            vmem_limit_bytes=48 * 1024 * 1024),
    )(q_lhs, qsq, ksq, k_t, v)

    if Mp != M:
        out = out[:M]
    return out


def _reference(queries, keys, values, kernel_len):
    """Pure-JAX reference mirroring the PyTorch forward."""
    kl = jnp.asarray(kernel_len, jnp.float32).reshape(())
    diff = queries[:, None, :] - keys[None, :, :]
    cdist = jnp.sqrt(jnp.sum(diff * diff, axis=-1))
    cdist = cdist / kl
    ker = (2.0 + jnp.cos(cdist * M2PI)) * (1.0 - cdist) / 3.0 \
        + jnp.sin(cdist * M2PI) / M2PI
    ker = ker * (ker > 0.0)
    ones = jnp.ones_like(values)
    return ker @ values / (ker @ ones) + 1e-6


if __name__ == "__main__":
    kernel_len = jnp.full((1,), 0.8, dtype=jnp.float32)  # stand-in for nn.Parameter

    # Case 1: single-tile path (matches the module's small-shape usage).
    kq, kk, kv = jax.random.split(jax.random.PRNGKey(0), 3)
    M, N, D, P = 8, 16, 16, 8
    # Scale inputs so distances stay within the kernel's compact support.
    queries = 0.05 * jax.random.normal(kq, (M, D), jnp.float32)
    keys = 0.05 * jax.random.normal(kk, (N, D), jnp.float32)
    values = jax.random.normal(kv, (N, P), jnp.float32)

    out = jax.block_until_ready(
        nw_sparse_kernel_regression(queries, keys, values, kernel_len))
    ref = _reference(queries, keys, values, kernel_len)
    assert out.shape == (M, P) and out.dtype == jnp.float32
    assert jnp.allclose(out, ref, atol=1e-4, rtol=1e-4), "mismatch (case 1)"

    # Case 2: exercises M tiling, N tiling and the padded-N sentinel path.
    k2q, k2k, k2v = jax.random.split(jax.random.PRNGKey(1), 3)
    M2, N2, D2, P2 = 24, 300, 16, 8
    q2 = 0.05 * jax.random.normal(k2q, (M2, D2), jnp.float32)
    ky2 = 0.05 * jax.random.normal(k2k, (N2, D2), jnp.float32)
    v2 = jax.random.normal(k2v, (N2, P2), jnp.float32)

    out2 = jax.block_until_ready(
        nw_sparse_kernel_regression(q2, ky2, v2, kernel_len, tm=8, tn=128))
    ref2 = _reference(q2, ky2, v2, kernel_len)
    assert out2.shape == (M2, P2)
    assert jnp.allclose(out2, ref2, atol=1e-4, rtol=1e-4), "mismatch (case 2)"

    # Case 3: default tile-size heuristics (>=2 M tiles, single large N tile).
    k3q, k3k, k3v = jax.random.split(jax.random.PRNGKey(2), 3)
    M3, N3, D3, P3 = 40, 200, 16, 8
    q3 = 0.05 * jax.random.normal(k3q, (M3, D3), jnp.float32)
    ky3 = 0.05 * jax.random.normal(k3k, (N3, D3), jnp.float32)
    v3 = jax.random.normal(k3v, (N3, P3), jnp.float32)

    out3 = jax.block_until_ready(
        nw_sparse_kernel_regression(q3, ky3, v3, kernel_len))
    ref3 = _reference(q3, ky3, v3, kernel_len)
    assert out3.shape == (M3, P3)
    assert jnp.allclose(out3, ref3, atol=1e-4, rtol=1e-4), "mismatch (case 3)"

    print("KERNEL_OK")
</pallas_src>

<mosaic_0001>
module attributes {stable_mosaic.version = 11 : i64} {
  func.func @_nw_kernel(%arg0: i32, %arg1: i32, %arg2: memref<8x16xf32, #tpu.memory_space<vmem>>, %arg3: memref<8x1xf32, #tpu.memory_space<vmem>>, %arg4: memref<1x128xf32, #tpu.memory_space<vmem>>, %arg5: memref<16x128xf32, #tpu.memory_space<vmem>>, %arg6: memref<128x8xf32, #tpu.memory_space<vmem>>, %arg7: memref<8x8xf32, #tpu.memory_space<vmem>>, %arg8: memref<8x8xf32, #tpu.memory_space<vmem>>, %arg9: memref<8x1xf32, #tpu.memory_space<vmem>>) attributes {dimension_semantics = [#tpu.dimension_semantics<parallel>, #tpu.dimension_semantics<arbitrary>], iteration_bounds = array<i64: 1, 1>, scalar_prefetch = 0 : i64, scratch_operands = 2 : i64, tpu.core_type = #tpu.core_type<tc>, window_params = [{transform_indices = @transform_0, window_bounds = array<i64: 8, 16>}, {transform_indices = @transform_1, window_bounds = array<i64: 8, 1>}, {transform_indices = @transform_2, window_bounds = array<i64: 1, 128>}, {transform_indices = @transform_3, window_bounds = array<i64: 16, 128>}, {transform_indices = @transform_4, window_bounds = array<i64: 128, 8>}, {transform_indices = @transform_5, window_bounds = array<i64: 8, 8>}]} {
    %c0_i32 = arith.constant 0 : i32
    %0 = arith.cmpi eq, %arg1, %c0_i32 : i32
    %1 = arith.extui %0 : i1 to i32
    %c0_i32_0 = arith.constant 0 : i32
    %2 = arith.cmpi ne, %1, %c0_i32_0 : i32
    scf.if %2 {
      %cst_30 = arith.constant 0.000000e+00 : f32
      %46 = vector.broadcast %cst_30 : f32 to vector<8x8xf32>
      %c0_31 = arith.constant 0 : index
      %c0_32 = arith.constant 0 : index
      %47 = vector.load %arg8[%c0_31, %c0_32] : memref<8x8xf32, #tpu.memory_space<vmem>>, vector<8x8xf32>
      tpu.vector_store %arg8[%c0_31, %c0_32], %46 {strides = array<i32>} : memref<8x8xf32, #tpu.memory_space<vmem>>, vector<8x8xf32>,
      %cst_33 = arith.constant 0.000000e+00 : f32
      %48 = vector.broadcast %cst_33 : f32 to vector<8x1xf32>
      %c0_34 = arith.constant 0 : index
      %c0_35 = arith.constant 0 : index
      %49 = vector.load %arg9[%c0_34, %c0_35] : memref<8x1xf32, #tpu.memory_space<vmem>>, vector<8x1xf32>
      tpu.vector_store %arg9[%c0_34, %c0_35], %48 {strides = array<i32>} : memref<8x1xf32, #tpu.memory_space<vmem>>, vector<8x1xf32>,
    } else {
    }
    %c0 = arith.constant 0 : index
    %c0_1 = arith.constant 0 : index
    %3 = vector.load %arg2[%c0, %c0_1] : memref<8x16xf32, #tpu.memory_space<vmem>>, vector<8x16xf32>
    %c0_2 = arith.constant 0 : index
    %c0_3 = arith.constant 0 : index
    %4 = vector.load %arg5[%c0_2, %c0_3] : memref<16x128xf32, #tpu.memory_space<vmem>>, vector<16x128xf32>
    %cst = arith.constant dense<0.000000e+00> : vector<8x128xf32>
    %5 = tpu.matmul %3, %4, %cst {dimension_numbers = #tpu.dot_dimension_numbers<[1], [0], [0], [1], [0, 0, 1, 1], [], []>} : vector<8x16xf32>, vector<16x128xf32>, vector<8x128xf32> -> vector<8x128xf32>
    %c0_4 = arith.constant 0 : index
    %c0_5 = arith.constant 0 : index
    %6 = vector.load %arg3[%c0_4, %c0_5] : memref<8x1xf32, #tpu.memory_space<vmem>>, vector<8x1xf32>
    %7 = vector.broadcast %6 : vector<8x1xf32> to vector<8x128xf32>
    %8 = arith.subf %7, %5 : vector<8x128xf32>
    %c0_6 = arith.constant 0 : index
    %c0_7 = arith.constant 0 : index
    %9 = vector.load %arg4[%c0_6, %c0_7] : memref<1x128xf32, #tpu.memory_space<vmem>>, vector<1x128xf32>
    %10 = vector.broadcast %9 : vector<1x128xf32> to vector<8x128xf32>
    %11 = arith.addf %8, %10 : vector<8x128xf32>
    %cst_8 = arith.constant 0.000000e+00 : f32
    %12 = vector.broadcast %cst_8 : f32 to vector<8x128xf32>
    %13 = arith.maximumf %11, %12 : vector<8x128xf32>
    %14 = math.sqrt %13 : vector<8x128xf32>
    %cst_9 = arith.constant 6.28318548 : f32
    %15 = vector.broadcast %cst_9 : f32 to vector<8x128xf32>
    %16 = arith.mulf %14, %15 : vector<8x128xf32>
    %17 = math.cos %16 : vector<8x128xf32>
    %cst_10 = arith.constant 2.000000e+00 : f32
    %18 = vector.broadcast %cst_10 : f32 to vector<8x128xf32>
    %19 = arith.addf %18, %17 : vector<8x128xf32>
    %cst_11 = arith.constant 1.000000e+00 : f32
    %20 = vector.broadcast %cst_11 : f32 to vector<8x128xf32>
    %21 = arith.subf %20, %14 : vector<8x128xf32>
    %22 = arith.mulf %19, %21 : vector<8x128xf32>
    %cst_12 = arith.constant 0.333333343 : f32
    %23 = vector.broadcast %cst_12 : f32 to vector<8x128xf32>
    %24 = arith.mulf %22, %23 : vector<8x128xf32>
    %25 = math.sin %16 : vector<8x128xf32>
    %cst_13 = arith.constant 0.159154937 : f32
    %26 = vector.broadcast %cst_13 : f32 to vector<8x128xf32>
    %27 = arith.mulf %25, %26 : vector<8x128xf32>
    %28 = arith.addf %24, %27 : vector<8x128xf32>
    %cst_14 = arith.constant 0.000000e+00 : f32
    %29 = vector.broadcast %cst_14 : f32 to vector<8x128xf32>
    %30 = arith.cmpf ogt, %28, %29 : vector<8x128xf32>
    %cst_15 = arith.constant 0.000000e+00 : f32
    %31 = vector.broadcast %cst_15 : f32 to vector<8x128xf32>
    %32 = arith.select %30, %28, %31 : vector<8x128xi1>, vector<8x128xf32>
    %c0_16 = arith.constant 0 : index
    %c0_17 = arith.constant 0 : index
    %33 = vector.load %arg8[%c0_16, %c0_17] : memref<8x8xf32, #tpu.memory_space<vmem>>, vector<8x8xf32>
    %c0_18 = arith.constant 0 : index
    %c0_19 = arith.constant 0 : index
    %34 = vector.load %arg6[%c0_18, %c0_19] : memref<128x8xf32, #tpu.memory_space<vmem>>, vector<128x8xf32>
    %cst_20 = arith.constant dense<0.000000e+00> : vector<8x8xf32>
    %35 = tpu.matmul %32, %34, %cst_20 {dimension_numbers = #tpu.dot_dimension_numbers<[1], [0], [0], [1], [0, 0, 1, 1], [], []>} : vector<8x128xf32>, vector<128x8xf32>, vector<8x8xf32> -> vector<8x8xf32>
    %36 = arith.addf %33, %35 : vector<8x8xf32>
    %c0_21 = arith.constant 0 : index
    %c0_22 = arith.constant 0 : index
    %37 = vector.load %arg8[%c0_21, %c0_22] : memref<8x8xf32, #tpu.memory_space<vmem>>, vector<8x8xf32>
    tpu.vector_store %arg8[%c0_21, %c0_22], %36 {strides = array<i32>} : memref<8x8xf32, #tpu.memory_space<vmem>>, vector<8x8xf32>,
    %c0_23 = arith.constant 0 : index
    %c0_24 = arith.constant 0 : index
    %38 = vector.load %arg9[%c0_23, %c0_24] : memref<8x1xf32, #tpu.memory_space<vmem>>, vector<8x1xf32>
    %cst_25 = arith.constant dense<0.000000e+00> : vector<8xf32>
    %39 = vector.multi_reduction <add>, %32, %cst_25 [1] : vector<8x128xf32> to vector<8xf32>
    %40 = vector.shape_cast %39 : vector<8xf32> to vector<8x1xf32>
    %41 = arith.addf %38, %40 : vector<8x1xf32>
    %c0_26 = arith.constant 0 : index
    %c0_27 = arith.constant 0 : index
    %42 = vector.load %arg9[%c0_26, %c0_27] : memref<8x1xf32, #tpu.memory_space<vmem>>, vector<8x1xf32>
    tpu.vector_store %arg9[%c0_26, %c0_27], %41 {strides = array<i32>} : memref<8x1xf32, #tpu.memory_space<vmem>>, vector<8x1xf32>,
    %c0_i32_28 = arith.constant 0 : i32
    %43 = arith.cmpi eq, %arg1, %c0_i32_28 : i32
    %44 = arith.extui %43 : i1 to i32
    %c0_i32_29 = arith.constant 0 : i32
    %45 = arith.cmpi ne, %44, %c0_i32_29 : i32
    scf.if %45 {
      %c0_30 = arith.constant 0 : index
      %c0_31 = arith.constant 0 : index
      %46 = vector.load %arg8[%c0_30, %c0_31] : memref<8x8xf32, #tpu.memory_space<vmem>>, vector<8x8xf32>
      %c0_32 = arith.constant 0 : index
      %c0_33 = arith.constant 0 : index
      %47 = vector.load %arg9[%c0_32, %c0_33] : memref<8x1xf32, #tpu.memory_space<vmem>>, vector<8x1xf32>
      %48 = vector.broadcast %47 : vector<8x1xf32> to vector<8x8xf32>
      %49 = arith.divf %46, %48 : vector<8x8xf32>
      %cst_34 = arith.constant 9.99999997E-7 : f32
      %50 = vector.broadcast %cst_34 : f32 to vector<8x8xf32>
      %51 = arith.addf %49, %50 : vector<8x8xf32>
      %c0_35 = arith.constant 0 : index
      %c0_36 = arith.constant 0 : index
      %52 = vector.load %arg7[%c0_35, %c0_36] : memref<8x8xf32, #tpu.memory_space<vmem>>, vector<8x8xf32>
      tpu.vector_store %arg7[%c0_35, %c0_36], %51 {strides = array<i32>} : memref<8x8xf32, #tpu.memory_space<vmem>>, vector<8x8xf32>,
    } else {
    }
    return
  }
  func.func @transform_0(%arg0: i32, %arg1: i32) -> (i32, i32) {
    %c0_i32 = arith.constant 0 : i32
    %c0_i32_0 = arith.constant 0 : i32
    return %arg0, %c0_i32 : i32, i32
  }
  func.func @transform_1(%arg0: i32, %arg1: i32) -> (i32, i32) {
    %c0_i32 = arith.constant 0 : i32
    %c0_i32_0 = arith.constant 0 : i32
    return %arg0, %c0_i32 : i32, i32
  }
  func.func @transform_2(%arg0: i32, %arg1: i32) -> (i32, i32) {
    %c0_i32 = arith.constant 0 : i32
    %c0_i32_0 = arith.constant 0 : i32
    return %c0_i32, %arg1 : i32, i32
  }
  func.func @transform_3(%arg0: i32, %arg1: i32) -> (i32, i32) {
    %c0_i32 = arith.constant 0 : i32
    %c0_i32_0 = arith.constant 0 : i32
    return %c0_i32, %arg1 : i32, i32
  }
  func.func @transform_4(%arg0: i32, %arg1: i32) -> (i32, i32) {
    %c0_i32 = arith.constant 0 : i32
    %c0_i32_0 = arith.constant 0 : i32
    return %arg1, %c0_i32 : i32, i32
  }
  func.func @transform_5(%arg0: i32, %arg1: i32) -> (i32, i32) {
    %c0_i32 = arith.constant 0 : i32
    %c0_i32_0 = arith.constant 0 : i32
    return %arg0, %c0_i32 : i32, i32
  }
}

</mosaic_0001>

<bundles_post_ra>
// kernel: tpu_custom_call.1
= control target key start
LH: loop header
LB: loop body
LE: loop exit
PB: predicated region body
PF: predicated region fallthrough
CT: control target
= control target key end

     0   :  { %vm32_vm0 = vcmask 130048   ;;  %v538_v3 = vmov 0   ;;  %s712_s0 = inlined_call_operand.vmem [shape: f32[8,16], index: 0, kind: input, shape index: {}]   ;;  %s713_s1 = inlined_call_operand.vmem [shape: f32[8,1], index: 1, kind: input, shape index: {}]   ;;  %s714_s2 = inlined_call_operand.vmem [shape: f32[1,128], index: 2, kind: input, shape index: {}]   ;;  %s715_s3 = inlined_call_operand.vmem [shape: f32[16,128], index: 3, kind: input, shape index: {}]   ;;  %s716_s4 = inlined_call_operand.vmem [shape: f32[128,8], index: 4, kind: input, shape index: {}]   ;;  %s717_s5 = inlined_call_operand.hbm [shape: f32[8,8], index: 5, kind: output, shape index: {}]  }
   0x1   :  { %v31_v0 = vld [vmem:[%s715_s3 + $0x8] sm:$0xff]  ;;  %v30_v1 = vld [vmem:[%s715_s3] sm:$0xff]  ;;  %505 = vset.pattern.permute.xlu0 %v538_v3 }
   0x2   :  { %v29_v2 = vld [vmem:[%s712_s0] sm:$0xff]  ;;  %50 = vmatpush.msra.mxu0 %v31_v0 }
   0x3   :  { %v56_v4 = vld [vmem:[%s713_s1] sm:$0xff] }
   0x4   :  { %10 = vsyncpa [#allocation5], 0  ;;  %59 = vperm.xlu0 %505, %v56_v4   ;;  %506 = vset.pattern.permute.xlu1 %v538_v3  ;;  %v415_v5 = vld [vmem:[%s716_s4 + $0x78] sm:$0xff]  ;;  %v414_v6 = vld [vmem:[%s716_s4 + $0x70] sm:$0xff]  ;;  %v539_v49 = vmov 683565275  }
   0x5   :  { %51 = vmatpush.msra.mxu0 %v30_v1  ;;  %416 = vmatpush.msra.mxu1 %v415_v5  ;;  %v413_v7 = vld [vmem:[%s716_s4 + $0x68] sm:$0xff]  ;;  %v412_v8 = vld [vmem:[%s716_s4 + $0x60] sm:$0xff]  ;;  %v411_v9 = vld [vmem:[%s716_s4 + $0x58] sm:$0xff]  ;;  %v540_v51 = vmov 2475754826   ;;  %s479_s6 = sshll.u32 %s717_s5, 4  ;;  %s480_s6 = int_to_ptr.hbm [resolvable:$true] %s479_s6 }
   0x6   :  { %488 = vmatmul.msk.f32.vlgmr.msra.gmra.mxu0 %vm32_vm0, %v29_v2  ;;  %v410_v10 = vld [vmem:[%s716_s4 + $0x50] sm:$0xff]  ;;  %v409_v11 = vld [vmem:[%s716_s4 + $0x48] sm:$0xff]  ;;  %v408_v12 = vld [vmem:[%s716_s4 + $0x40] sm:$0xff]  ;;  %v541_v54 = vmov 2131351028  }
   0x7   :  { %417 = vmatpush.msra.mxu1 %v414_v6  ;;  %v407_v13 = vld [vmem:[%s716_s4 + $0x38] sm:$0xff]  ;;  %v406_v14 = vld [vmem:[%s716_s4 + $0x30] sm:$0xff]  ;;  %v405_v15 = vld [vmem:[%s716_s4 + $0x28] sm:$0xff]  ;;  %v542_v57 = vmov 2102212464  }
   0x8   :  { %v404_v16 = vld [vmem:[%s716_s4 + $0x20] sm:$0xff]  ;;  %v403_v17 = vld [vmem:[%s716_s4 + $0x18] sm:$0xff]  ;;  %v402_v20 = vld [vmem:[%s716_s4 + $0x10] sm:$0xff]  ;;  %v543_v60 = vmov 920167782  }
   0x9   :  { %418 = vmatpush.msra.mxu1 %v413_v7  ;;  %v507_v19 = vld [vmem:[%s714_s2] ss:$0 sm:$0xff]  ;;  %v401_v23 = vld [vmem:[%s716_s4 + $0x8] sm:$0xff]  ;;  %v544_v63 = vmov 1326507024   ;;  %s546_s2 = smov [#allocation4]  }
   0xa   :  { %v400_v25 = vld [vmem:[%s716_s4] sm:$0xff]  ;;  %s477_s4 = sshll.u32 %s546_s2, 4  ;;  %s478_s4 = int_to_ptr.vmem [resolvable:$true] %s477_s4 }
   0xb   :  { %419 = vmatpush.msra.mxu1 %v412_v8 }
   0xd   :  { %420 = vmatpush.msra.mxu1 %v411_v9 }
   0xf   :  { %421 = vmatpush.msra.mxu1 %v410_v10 }
  0x11   :  { %422 = vmatpush.msra.mxu1 %v409_v11 }
  0x13   :  { %423 = vmatpush.msra.mxu1 %v408_v12 }
  0x15   :  { %424 = vmatpush.msra.mxu1 %v407_v13 }
  0x17   :  { %425 = vmatpush.msra.mxu1 %v406_v14 }
  0x19   :  { %426 = vmatpush.msra.mxu1 %v405_v15 }
  0x1b   :  { %427 = vmatpush.msra.mxu1 %v404_v16 }
  0x1d   :  { %428 = vmatpush.msra.mxu1 %v403_v17 }
  0x1f   :  { %429 = vmatpush.msra.mxu1 %v402_v20 }
  0x21   :  { %430 = vmatpush.msra.mxu1 %v401_v23 }
  0x23   :  { %431 = vmatpush.msra.mxu1 %v400_v25 }
  0x76   :  { %v60_v18 = vpop.permute.xlu0 %59 }
  0x83   :  { %v53_v21 = vpop.f32.mrf.mxu0 }
  0x84   :  { %v62_v22 = vsub.f32 %v60_v18, %v53_v21 }
  0x86   :  { %v67_v24 = vadd.f32 %v507_v19, %v62_v22 }
  0x88   :  { %v68_v26 = vmax.f32 %v67_v24, 0.0 }
  0x8a   :  { %508 = vrsqrt.f32 %v68_v26  ;;  %vm76_vm1 = vcmp.eq.f32.partialorder %v68_v26, inf  ;;  %v79_v34 = vand.u32 2147483648, %v68_v26  ;;  %vm78_vm2 = vcmp.eq.f32.partialorder %v68_v26, 0.0 }
  0x90   :  { %v509_v27 = vpop.eup %508 }
  0x91   :  { %v70_v28 = vmul.f32 %v509_v27, %v68_v26 }
  0x93   :  { %v71_v29 = vmul.f32 %v509_v27, %v70_v28 }
  0x95   :  { %v72_v30 = vmul.f32 0.5, %v71_v29 }
  0x97   :  { %v73_v31 = vsub.f32 1.5, %v72_v30 }
  0x99   :  { %v74_v32 = vmul.f32 %v509_v27, %v73_v31 }
  0x9b   :  { %v75_v33 = vmul.f32 %v74_v32, %v68_v26 }
  0x9d   :  { %v77_v35 = vsel %vm76_vm1, %v68_v26, %v75_v33 }
  0x9e   :  { %v642_v36 = vsel %vm78_vm2, %v79_v34, %v77_v35 }
  0x9f   :  { %v645_v37 = vmul.f32 6.2831855, %v642_v36 }
  0xa1   :  { %v85_v38 = vand.u32 2139095040, %v645_v37  ;;  %v82_v41 = vand.u32 2147483647, %v645_v37  ;;  %vm84_vm15 = vcmp.lt.s32.totalorder %v645_v37, 0 }
  0xa3   :  { %v86_v39 = vshrl.u32 %v85_v38, 23  ;;  %v89_v43 = vand.u32 8388607, %v82_v41  ;;  %vm83_vm0 = vcmp.le.f32.partialorder %v82_v41, 0.7853982 }
  0xa5   :  { %v489_v40 = vadd.s32 4294967169, %v86_v39  ;;  %v90_v47 = vor.u32 8388608, %v89_v43 }
  0xa7   :  { %v92_v42 = vadd.s32 1, %v489_v40  ;;  %v662_v7 = vshll.u32 %v90_v47, 8 }
  0xa9   :  { %vm93_vm3 = vcmp.gt.s32.totalorder %v92_v42, 0  ;;  %v131_v16 = vand.u32 65535, %v662_v7  ;;  %v132_v17 = vshrl.u32 %v662_v7, 16 }
  0xaa   :  { %v94_v44 = vsel %vm93_vm3, %v92_v42, 0 }
  0xab   :  { %v96_v45 = vand.u32 31, %v94_v44  ;;  %v653_v48 = vshrl.u32 %v94_v44, 5 }
  0xad   :  { %v651_v46 = vsub.s32 32, %v96_v45  ;;  %v99_v50 = vshll.u32 %v539_v49, %v96_v45  ;;  %v102_v52 = vshll.u32 %v540_v51, %v96_v45  ;;  %v105_v56 = vshll.u32 %v541_v54, %v96_v45 }
  0xae   :  { %v108_v59 = vshll.u32 %v542_v57, %v96_v45  ;;  %v111_v62 = vshll.u32 %v543_v60, %v96_v45  ;;  %vm114_vm4 = vcmp.lt.s32.totalorder %v653_v48, 1  ;;  %vm117_vm5 = vcmp.lt.s32.totalorder %v653_v48, 4 }
  0xaf   :  { %v100_v53 = vshrl.u32 %v540_v51, %v651_v46  ;;  %v103_v55 = vshrl.u32 %v541_v54, %v651_v46  ;;  %v106_v58 = vshrl.u32 %v542_v57, %v651_v46  ;;  %v109_v61 = vshrl.u32 %v543_v60, %v651_v46 }
  0xb0   :  { %v112_v0 = vshrl.u32 %v544_v63, %v651_v46  ;;  %vm116_vm6 = vcmp.lt.s32.totalorder %v653_v48, 3  ;;  %vm115_vm7 = vcmp.lt.s32.totalorder %v653_v48, 2  ;;  %v98_v45 = vshrl.u32 %v539_v49, %v651_v46 }
  0xb1   :  { %v101_v1 = vor.u32 %v100_v53, %v99_v50  ;;  %v104_v2 = vor.u32 %v103_v55, %v102_v52  ;;  %v107_v4 = vor.u32 %v106_v58, %v105_v56  ;;  %v110_v5 = vor.u32 %v109_v61, %v108_v59 }
  0xb2   :  { %v113_v6 = vor.u32 %v112_v0, %v111_v62 }
  0xb3   :  { %v122_v8 = vsel %vm114_vm4, %v101_v1, %v104_v2  ;;  %v126_v9 = vsel %vm114_vm4, %v104_v2, %v107_v4  ;;  %v123_v10 = vsel %vm117_vm5, %v110_v5, 920167782  ;;  %v119_v42 = vsel %vm117_vm5, %v107_v4, 2102212464 }
  0xb4   :  { %v127_v11 = vsel %vm117_vm5, %v113_v6, 1326507024  ;;  %v124_v12 = vsel %vm116_vm6, %v107_v4, %v123_v10  ;;  %v118_v54 = vsel %vm114_vm4, %v98_v45, %v101_v1  ;;  %v120_v55 = vsel %vm116_vm6, %v104_v2, %v119_v42 }
  0xb5   :  { %v128_v13 = vsel %vm116_vm6, %v110_v5, %v127_v11  ;;  %v125_v14 = vsel %vm115_vm7, %v122_v8, %v124_v12  ;;  %v121_v46 = vsel %vm115_vm7, %v118_v54, %v120_v55 }
  0xb6   :  { %v129_v15 = vsel %vm115_vm7, %v126_v9, %v128_v13  ;;  %v155_v20 = vand.u32 65535, %v125_v14  ;;  %v156_v21 = vshrl.u32 %v125_v14, 16  ;;  %v175_v62 = vmul.u32 %v662_v7, %v121_v46 }
  0xb7   :  { %v133_v18 = vand.u32 65535, %v129_v15  ;;  %v134_v19 = vshrl.u32 %v129_v15, 16  ;;  %vm225_vm7 = vweird.f32 %v645_v37 }
  0xb8   :  { %v158_v24 = vmul.u32 %v156_v21, %v131_v16  ;;  %v159_v25 = vmul.u32 %v155_v20, %v132_v17  ;;  %v157_v29 = vmul.u32 %v155_v20, %v131_v16  ;;  %v160_v33 = vmul.u32 %v156_v21, %v132_v17 }
  0xb9   :  { %v136_v22 = vmul.u32 %v134_v19, %v131_v16  ;;  %v137_v23 = vmul.u32 %v133_v18, %v132_v17  ;;  %v135_v26 = vmul.u32 %v133_v18, %v131_v16  ;;  %v138_v28 = vmul.u32 %v134_v19, %v132_v17 }
  0xba   :  { %v161_v30 = vshll.u32 %v158_v24, 16  ;;  %v163_v35 = vshll.u32 %v159_v25, 16  ;;  %v162_v52 = vshrl.u32 %v158_v24, 16  ;;  %v164_v58 = vshrl.u32 %v159_v25, 16 }
  0xbb   :  { %v139_v27 = vshll.u32 %v136_v22, 16  ;;  %v141_v31 = vshll.u32 %v137_v23, 16  ;;  %v140_v47 = vshrl.u32 %v136_v22, 16  ;;  %v142_v56 = vshrl.u32 %v137_v23, 16 }
  0xbc   :  { %vm165_vm9 = vc.u32 %v157_v29, %v161_v30  ;;  %v167_v38 = vadd.s32 %v161_v30, %v157_v29 }
  0xbd   :  { %vm143_vm8 = vc.u32 %v135_v26, %v139_v27  ;;  %v145_v32 = vadd.s32 %v139_v27, %v135_v26  ;;  %v166_v40 = vsel %vm165_vm9, 1, %v538_v3  ;;  %vm27_vm9 = vcmask 7168  }
  0xbe   :  { %v144_v34 = vsel %vm143_vm8, 1, %v538_v3  ;;  %v168_v44 = vadd.s32 %v166_v40, %v160_v33  ;;  %vm169_vm11 = vc.u32 %v167_v38, %v163_v35  ;;  %v171_v61 = vadd.s32 %v167_v38, %v163_v35 }
  0xbf   :  { %v146_v39 = vadd.s32 %v144_v34, %v138_v28  ;;  %vm147_vm10 = vc.u32 %v145_v32, %v141_v31  ;;  %v170_v51 = vsel %vm169_vm11, 1, %v538_v3 }
  0xc0   :  { %v148_v43 = vsel %vm147_vm10, 1, %v538_v3  ;;  %v172_v53 = vadd.s32 %v170_v51, %v168_v44  ;;  %vm25_vm10 = vcmask 64512  }
  0xc1   :  { %v150_v50 = vadd.s32 %v148_v43, %v146_v39 }
  0xc2   :  { %v173_v59 = vadd.s32 %v172_v53, %v162_v52 }
  0xc3   :  { %v151_v57 = vadd.s32 %v150_v50, %v140_v47 }
  0xc4   :  { %v174_v49 = vadd.s32 %v173_v59, %v164_v58 }
  0xc5   :  { %v152_v60 = vadd.s32 %v151_v57, %v142_v56 }
  0xc6   :  { %v178_v3 = vadd.s32 1, %v174_v49 }
  0xc7   :  { %vm177_vm12 = vc.u32 %v152_v60, %v171_v61  ;;  %v176_v48 = vadd.s32 %v171_v61, %v152_v60  ;;  %v237_v60 = vsub.f32 1.0, %v642_v36 }
  0xc8   :  { %v179_v63 = vsel %vm177_vm12, %v178_v3, %v174_v49 }
  0xc9   :  { %v180_v0 = vadd.s32 %v179_v63, %v175_v62 }
  0xcb   :  { %v181_v1 = vadd.s32 536870912, %v180_v0 }
  0xcd   :  { %v182_v4 = vshrl.u32 %v181_v1, 30 }
  0xcf   :  { %v183_v5 = vshll.u32 %v182_v4, 30  ;;  %v206_v24 = vsub.s32 4, %v182_v4 }
  0xd1   :  { %v184_v2 = vsub.s32 %v180_v0, %v183_v5  ;;  %v207_v29 = vsel %vm84_vm15, %v206_v24, %v182_v4  ;;  %v545_v0 = vmov 0.0  }
  0xd2   :  { %v209_v32 = vsel %vm83_vm0, 0, %v207_v29  ;;  %28 = vst.msk [vmem:[#allocation3] sm:$0xff] %vm27_vm9, %v545_v0 }
  0xd3   :  { %vm185_vm13 = vcmp.lt.s32.totalorder %v184_v2, 0  ;;  %v186_v6 = vsub.s32 0, %v184_v2  ;;  %v384_v39 = vadd.s32 3, %v209_v32  ;;  %v226_v44 = vand.u32 3, %v209_v32  ;;  %26 = vst.msk [vmem:[#allocation2] sm:$0xff] %vm25_vm10, %v545_v0 }
  0xd5   :  { %v187_v8 = vsel %vm185_vm13, %v186_v6, %v184_v2  ;;  %v385_v45 = vand.u32 3, %v384_v39  ;;  %vm227_vm1 = vcmp.lt.s32.totalorder %v226_v44, 2  ;;  %vm228_vm2 = vcmp.eq.s32.totalorder %v226_v44, 0 }
  0xd6   :  { %v188_v9 = vclz %v187_v8  ;;  %vm231_vm3 = vcmp.eq.s32.totalorder %v226_v44, 2 }
  0xd7   :  { %vm386_vm4 = vcmp.lt.s32.totalorder %v385_v45, 2  ;;  %vm387_vm5 = vcmp.eq.s32.totalorder %v385_v45, 0  ;;  %vm390_vm6 = vcmp.eq.s32.totalorder %v385_v45, 2 }
  0xd8   :  { %v490_v10 = vadd.s32 4294967294, %v188_v9 }
  0xda   :  { %vm491_vm14 = vcmp.lt.s32.totalorder %v490_v10, 0  ;;  %v399_v36 = vld [vmem:[#allocation2] sm:$0xff] }
  0xdb   :  { %v191_v11 = vsel %vm491_vm14, 0, %v490_v10 }
  0xdc   :  { %v192_v12 = vsub.s32 32, %v191_v11  ;;  %v196_v13 = vsub.s32 4294967266, %v191_v11  ;;  %v193_v14 = vshll.u32 %v184_v2, %v191_v11 }
  0xde   :  { %v194_v15 = vshrl.u32 %v176_v48, %v192_v12  ;;  %v197_v16 = vadd.s32 127, %v196_v13 }
  0xe0   :  { %v195_v7 = vor.u32 %v194_v15, %v193_v14  ;;  %v198_v17 = vshll.u32 %v197_v16, 23 }
  0xe2   :  { %v199_v18 = vor.u32 4788187, %v198_v17  ;;  %v202_v20 = vcvt.s32.f32 %v195_v7 }
  0xe4   :  { %v200_v19 = vand.u32 2147483647, %v199_v18 }
  0xe6   :  { %v203_v21 = vmul.f32 %v202_v20, %v200_v19 }
  0xe8   :  { %v204_v22 = vxor.u32 2147483648, %v203_v21 }
  0xea   :  { %v205_v23 = vsel %vm84_vm15, %v204_v22, %v203_v21 }
  0xeb   :  { %v208_v25 = vsel %vm83_vm0, %v645_v37, %v205_v23  ;;  %v439_v37 = vld [vmem:[#allocation3] sm:$0xff] }
  0xec   :  { %v210_v26 = vmul.f32 %v208_v25, %v208_v25 }
  0xee   :  { %v211_v27 = vmul.f32 -0.001358992, %v210_v26  ;;  %v218_v28 = vmul.f32 -0.00019511016, %v210_v26 }
  0xf0   :  { %v212_v30 = vadd.f32 0.041655596, %v211_v27  ;;  %v219_v31 = vadd.f32 0.008332121, %v218_v28 }
  0xf2   :  { %v213_v33 = vmul.f32 %v212_v30, %v210_v26  ;;  %v220_v34 = vmul.f32 %v219_v31, %v210_v26 }
  0xf4   :  { %v214_v35 = vadd.f32 -0.4999988, %v213_v33  ;;  %v221_v38 = vadd.f32 -0.16666654, %v220_v34 }
  0xf6   :  { %v215_v40 = vmul.f32 %v214_v35, %v210_v26  ;;  %v222_v42 = vmul.f32 %v221_v38, %v210_v26 }
  0xf8   :  { %v216_v43 = vadd.f32 1.0, %v215_v40  ;;  %v223_v41 = vadd.f32 1.0, %v222_v42 }
  0xfa   :  { %v224_v47 = vmul.f32 %v223_v41, %v208_v25  ;;  %v232_v50 = vxor.u32 2147483648, %v216_v43 }
  0xfc   :  { %v229_v51 = vxor.u32 2147483648, %v224_v47  ;;  %v233_v53 = vsel %vm231_vm3, %v232_v50, %v224_v47  ;;  %v392_v55 = vsel %vm390_vm6, %v232_v50, %v224_v47 }
  0xfe   :  { %v230_v52 = vsel %vm228_vm2, %v216_v43, %v229_v51  ;;  %v389_v54 = vsel %vm387_vm5, %v216_v43, %v229_v51 }
  0xff   :  { %v234_v56 = vsel %vm227_vm1, %v230_v52, %v233_v53  ;;  %v393_v57 = vsel %vm386_vm4, %v389_v54, %v392_v55 }
 0x100   :  { %v235_v58 = vsel %vm225_vm7, nan, %v234_v56  ;;  %v394_v61 = vsel %vm225_vm7, nan, %v393_v57 }
 0x101   :  { %v236_v59 = vadd.f32 2.0, %v235_v58  ;;  %v395_v3 = vmul.f32 0.15915494, %v394_v61 }
 0x103   :  { %v238_v46 = vmul.f32 %v237_v60, %v236_v59 }
 0x105   :  { %v239_v49 = vmul.f32 0.33333334, %v238_v46 }
 0x107   :  { %v396_v62 = vadd.f32 %v395_v3, %v239_v49 }
 0x109   :  { %vm397_vm8 = vcmp.gt.f32.partialorder %v396_v62, 0.0 }
 0x10a   :  { %495 = vmatmul.msk.f32.vlgmr.msra.gmra.mxu1 %vm397_vm8, %v396_v62  ;;  %v398_v63 = vsel %vm397_vm8, %v396_v62, 0.0 }
 0x10b   :  { %440 = vadd.xlane.f32.xlu0 %v398_v63 }
 0x17e   :  { %v441_v1 = vpop.xlane.xlu0 %440 }
 0x17f   :  { %v442_v4 = vadd.f32 %v441_v1, %v439_v37 }
 0x181   :  { %444 = vst.msk [vmem:[#allocation3] sm:$0xff] %vm27_vm9, %v442_v4 }
 0x187   :  { %v433_v5 = vpop.f32.mrf.mxu1 }
 0x188   :  { %v436_v2 = vadd.f32 %v433_v5, %v399_v36  ;;  %v449_v6 = vld [vmem:[#allocation3] sm:$0xff] }
 0x189   :  { %452 = vperm.xlu1 %506, %v449_v6  }
 0x18a   :  { %438 = vst.msk [vmem:[#allocation2] sm:$0xff] %vm25_vm10, %v436_v2 }
 0x191   :  { %v448_v7 = vld [vmem:[#allocation2] sm:$0xff] }
 0x1fb   :  { %v453_v8 = vpop.permute.xlu1 %452 }
 0x1fc   :  { %510 = vrcp.f32 %v453_v8  ;;  %v466_v48 = vand.u32 2147483648, %v453_v8  ;;  %v464_v13 = vand.u32 2147483647, %v453_v8  ;;  %vm460_vm12 = vweird.f32 %v453_v8 }
 0x1fe   :  { %v467_v15 = vor.u32 1.1754944e-38, %v466_v48  ;;  %vm465_vm14 = vcmp.eq.f32.partialorder %v464_v13, 8.507059e+37 }
 0x202   :  { %v511_v9 = vpop.eup %510 }
 0x203   :  { %v456_v10 = vmul.f32 %v511_v9, %v453_v8  ;;  %vm461_vm11 = vweird.f32 %v511_v9 }
 0x204   :  { %vm462_vm13 = vmor %vm460_vm12, %vm461_vm11 }
 0x205   :  { %v457_v11 = vsub.f32 1.0, %v456_v10 }
 0x207   :  { %v458_v12 = vmul.f32 %v511_v9, %v457_v11 }
 0x209   :  { %v459_v14 = vadd.f32 %v511_v9, %v458_v12 }
 0x20b   :  { %v463_v16 = vsel %vm462_vm13, %v511_v9, %v459_v14 }
 0x20c   :  { %v468_v17 = vsel %vm465_vm14, %v467_v15, %v463_v16 }
 0x20d   :  { %v469_v18 = vmul.f32 %v468_v17, %v448_v7 }
 0x20f   :  { %v470_v19 = vadd.f32 1e-06, %v469_v18 }
 0x211   :  { %471 = vst.msk [vmem:[#allocation4] sm:$0xff] %vm25_vm10, %v470_v19 }
 0x212   :  { %482 = dma.vmem_to_hbm [thread:$0]  %s478_s4, 128, %s480_s6, [#allocation5]  }
 0x213   :  { %536 = dma.done.wait [#allocation5], 128  }
 0x214   :  { %537 = vsyncadd [#allocation5], 4294967168 }
 0x215   :  { %487 = vsyncpa [#allocation5], 1 }

</bundles_post_ra>
